<compile_context>
chip_gen: v6e
topology: v6e:2x2x1
jax: 0.10.0
libtpu: 0.0.40
codegen_flags: <defaults>
</compile_context>

<pallas_src>
import jax
import jax.numpy as jnp
from jax.experimental import pallas as pl
from jax.experimental.pallas import tpu as pltpu


def node_op_kernel(sw_ref, x0_ref, x1_ref, kp_ref, kn_ref,
                   wprev_ref, wcent_ref, wnext_ref, bias_ref,
                   gamma_ref, beta_ref, o_ref):
    """One Cout-block of the Node_OP forward on a (C, B*L) lane-dense slab."""
    f32 = jnp.float32
    P = x0_ref.shape[1]                       # P == B * L

    # ---- weighted sum of the node inputs (SMEM scalars) + ReLU ----
    w0 = sw_ref[0]
    w1 = sw_ref[1]
    x = jnp.maximum(x0_ref[...] * w0 + x1_ref[...] * w1, 0.0)         # (C, P)

    # ---- k=3 depthwise neighbours: XLU lane rolls + precomputed edge masks ----
    x_prev = pltpu.roll(x, shift=1, axis=1) * kp_ref[...]             # x[l-1], 0 at seq starts
    x_next = pltpu.roll(x, shift=P - 1, axis=1) * kn_ref[...]         # x[l+1], 0 at seq ends

    # ---- depthwise folded into pointwise: three accumulating MXU dots ----
    z = jnp.dot(wcent_ref[...], x, preferred_element_type=f32)        # (cout_blk, P)
    z = z + jnp.dot(wprev_ref[...], x_prev, preferred_element_type=f32)
    z = z + jnp.dot(wnext_ref[...], x_next, preferred_element_type=f32)
    z = z + bias_ref[...]                                             # folded conv biases

    # ---- BatchNorm1d: training-mode batch stats, two-pass variance ----
    inv_n = 1.0 / float(P)
    mean = jnp.sum(z, axis=1, keepdims=True) * inv_n                  # (cout_blk, 1)
    d = z - mean
    var = jnp.sum(d * d, axis=1, keepdims=True) * inv_n
    z_hat = d * jax.lax.rsqrt(var + 1e-5)
    o_ref[...] = gamma_ref[...] * z_hat + beta_ref[...]


def _num_cout_blocks(cout):
    """Split Cout only where a second TensorCore exists (v7x)."""
    try:
        kind = jax.devices()[0].device_kind.lower()
    except Exception:
        kind = ""
    if "v7" in kind and cout >= 16 and cout % 16 == 0:
        return 2
    return 1


def node_op_forward_slab(x0_2d, x1_2d, params, *, batch, seq_len, cout_block=None):
    """Slab-layout entry point: x0_2d, x1_2d are (C, B*L) f32; returns (Cout, B*L).

    Chained Node_OPs should call this directly so activations stay in the
    lane-concatenated slab layout (no HBM transpose round-trips between nodes).
    """
    C, P = x0_2d.shape
    assert P == batch * seq_len
    Cout = params["w_pw"].shape[0]

    if cout_block is None:
        cout_block = Cout // _num_cout_blocks(Cout)
    assert Cout % cout_block == 0
    assert cout_block == Cout or cout_block % 8 == 0
    grid = (Cout // cout_block,)

    # Rough VMEM budget for the single-slab path (double-buffered in/out).
    # TODO(synk): replace with a P-tiled two-pass BN path when this trips.
    assert (2 * C + Cout) * P * 4 * 2 < 24 * 1024 * 1024, \
        "B*L too large for the single-slab path; needs P-tiling"

    # ---- tiny wrapper-side precomputation on weights (negligible XLA ops) ----
    sig_w = jax.nn.sigmoid(params["mean_weight"]).astype(jnp.float32)      # (2,)
    wp = params["w_pw"]                                                    # (Cout, C)
    wd = params["w_dw"]                                                    # (C, 3)
    w_prev = wp * wd[None, :, 0]                                           # (Cout, C)
    w_cent = wp * wd[None, :, 1]
    w_next = wp * wd[None, :, 2]
    bias_const = (wp @ params["b_dw"] + params["b_pw"]).reshape(Cout, 1)   # (Cout, 1)

    # Sequence-boundary masks for the lane-concatenated slab, built once.
    pos = jnp.arange(P, dtype=jnp.int32) % seq_len
    keep_prev = (pos != 0).astype(jnp.float32).reshape(1, P)
    keep_next = (pos != seq_len - 1).astype(jnp.float32).reshape(1, P)

    out2d = pl.pallas_call(
        node_op_kernel,
        out_shape=jax.ShapeDtypeStruct((Cout, P), jnp.float32),
        grid=grid,
        in_specs=[
            pl.BlockSpec(memory_space=pltpu.MemorySpace.SMEM),        # sigmoid(mean_weight)
            pl.BlockSpec((C, P), lambda j: (0, 0)),                   # x0 slab
            pl.BlockSpec((C, P), lambda j: (0, 0)),                   # x1 slab
            pl.BlockSpec((1, P), lambda j: (0, 0)),                   # keep_prev mask
            pl.BlockSpec((1, P), lambda j: (0, 0)),                   # keep_next mask
            pl.BlockSpec((cout_block, C), lambda j: (j, 0)),          # folded W (k=0)
            pl.BlockSpec((cout_block, C), lambda j: (j, 0)),          # folded W (k=1)
            pl.BlockSpec((cout_block, C), lambda j: (j, 0)),          # folded W (k=2)
            pl.BlockSpec((cout_block, 1), lambda j: (j, 0)),          # folded conv bias
            pl.BlockSpec((cout_block, 1), lambda j: (j, 0)),          # bn gamma
            pl.BlockSpec((cout_block, 1), lambda j: (j, 0)),          # bn beta
        ],
        out_specs=pl.BlockSpec((cout_block, P), lambda j: (j, 0)),
        compiler_params=pltpu.CompilerParams(
            dimension_semantics=("parallel",),
            vmem_limit_bytes=32 * 1024 * 1024),
    )(sig_w, x0_2d, x1_2d, keep_prev, keep_next,
      w_prev, w_cent, w_next, bias_const,
      params["gamma"].reshape(Cout, 1), params["beta"].reshape(Cout, 1))

    return out2d


def node_op_forward(x0, x1, params, *, cout_block=None):
    """(B, C, L) boundary wrapper around the slab kernel. Returns (B, Cout, L)."""
    B, C, L = x0.shape
    Cout = params["w_pw"].shape[0]
    # Layout conversion happens only at model boundaries; chained nodes should
    # use node_op_forward_slab directly and stay in (C, B*L).
    x0_2d = jnp.transpose(x0, (1, 0, 2)).reshape(C, B * L)
    x1_2d = jnp.transpose(x1, (1, 0, 2)).reshape(C, B * L)
    out2d = node_op_forward_slab(x0_2d, x1_2d, params,
                                 batch=B, seq_len=L, cout_block=cout_block)
    return jnp.transpose(out2d.reshape(Cout, B, L), (1, 0, 2))


def node_op_reference(x0, x1, params):
    """Pure-JAX reference mirroring the PyTorch forward (biases included)."""
    w = jax.nn.sigmoid(params["mean_weight"])
    out = w[0] * x0 + w[1] * x1
    x = jnp.maximum(out, 0.0)
    B, C, L = x.shape
    xpad = jnp.pad(x, ((0, 0), (0, 0), (1, 1)))
    wd = params["w_dw"]
    y = (wd[None, :, 0:1] * xpad[:, :, 0:L]
         + wd[None, :, 1:2] * xpad[:, :, 1:L + 1]
         + wd[None, :, 2:3] * xpad[:, :, 2:L + 2]
         + params["b_dw"][None, :, None])
    z = jnp.einsum('oi,bil->bol', params["w_pw"], y) + params["b_pw"][None, :, None]
    mean = jnp.mean(z, axis=(0, 2), keepdims=True)
    var = jnp.mean((z - mean) ** 2, axis=(0, 2), keepdims=True)
    z_hat = (z - mean) / jnp.sqrt(var + 1e-5)
    return params["gamma"][None, :, None] * z_hat + params["beta"][None, :, None]


if __name__ == "__main__":
    B, C, L = 2, 16, 128          # batch, channels (inplanes == outplanes), seq length
    Cout = C                      # non-input node: Triplet_unit(outplanes, outplanes, stride=1)

    key = jax.random.PRNGKey(0)
    k0, k1, k2, k3, k4, k5 = jax.random.split(key, 6)

    x0 = jax.random.normal(k0, (B, C, L), jnp.float32)
    x1 = jax.random.normal(k1, (B, C, L), jnp.float32)

    # Deterministic parameter init (shapes follow the PyTorch module's __init__).
    bound_dw = 1.0 / jnp.sqrt(3.0)       # depthwise: fan_in = 1 * kernel_size(3)
    bound_pw = 1.0 / jnp.sqrt(float(C))  # pointwise: fan_in = C * 1
    params = {
        "mean_weight": jnp.ones((2,), jnp.float32),                                   # nn.Parameter(torch.ones(2))
        "w_dw": jax.random.uniform(k2, (C, 3), jnp.float32, -bound_dw, bound_dw),      # Conv1d(C,C,3,groups=C).weight squeezed
        "b_dw": jax.random.uniform(k3, (C,), jnp.float32, -bound_dw, bound_dw),
        "w_pw": jax.random.uniform(k4, (Cout, C), jnp.float32, -bound_pw, bound_pw),   # Conv1d(C,Cout,1).weight squeezed
        "b_pw": jax.random.uniform(k5, (Cout,), jnp.float32, -bound_pw, bound_pw),
        "gamma": jnp.ones((Cout,), jnp.float32),                                       # BatchNorm1d default affine init
        "beta": jnp.zeros((Cout,), jnp.float32),
    }

    out = node_op_forward(x0, x1, params)
    out = jax.block_until_ready(out)

    ref = node_op_reference(x0, x1, params)
    assert out.shape == (B, Cout, L), out.shape
    assert bool(jnp.all(jnp.isfinite(out)))
    max_err = float(jnp.max(jnp.abs(out - ref)))
    assert max_err < 1e-4, f"max abs error {max_err}"

    print("KERNEL_OK")
</pallas_src>

<mosaic_0001>
module attributes {stable_mosaic.version = 11 : i64} {
  func.func @node_op_kernel(%arg0: i32, %arg1: memref<2xf32, #tpu.memory_space<smem>>, %arg2: memref<16x256xf32, #tpu.memory_space<vmem>>, %arg3: memref<16x256xf32, #tpu.memory_space<vmem>>, %arg4: memref<1x256xf32, #tpu.memory_space<vmem>>, %arg5: memref<1x256xf32, #tpu.memory_space<vmem>>, %arg6: memref<16x16xf32, #tpu.memory_space<vmem>>, %arg7: memref<16x16xf32, #tpu.memory_space<vmem>>, %arg8: memref<16x16xf32, #tpu.memory_space<vmem>>, %arg9: memref<16x1xf32, #tpu.memory_space<vmem>>, %arg10: memref<16x1xf32, #tpu.memory_space<vmem>>, %arg11: memref<16x1xf32, #tpu.memory_space<vmem>>, %arg12: memref<16x256xf32, #tpu.memory_space<vmem>>) attributes {dimension_semantics = [#tpu.dimension_semantics<parallel>], iteration_bounds = array<i64: 1>, scalar_prefetch = 0 : i64, scratch_operands = 0 : i64, tpu.core_type = #tpu.core_type<tc>, window_params = [{transform_indices = @transform_0, window_bounds = array<i64: 2>}, {pipeline_mode = #tpu.pipeline_mode<synchronous>, transform_indices = @transform_1, window_bounds = array<i64: 16, 256>}, {pipeline_mode = #tpu.pipeline_mode<synchronous>, transform_indices = @transform_2, window_bounds = array<i64: 16, 256>}, {pipeline_mode = #tpu.pipeline_mode<synchronous>, transform_indices = @transform_3, window_bounds = array<i64: 1, 256>}, {pipeline_mode = #tpu.pipeline_mode<synchronous>, transform_indices = @transform_4, window_bounds = array<i64: 1, 256>}, {transform_indices = @transform_5, window_bounds = array<i64: 16, 16>}, {transform_indices = @transform_6, window_bounds = array<i64: 16, 16>}, {transform_indices = @transform_7, window_bounds = array<i64: 16, 16>}, {transform_indices = @transform_8, window_bounds = array<i64: 16, 1>}, {transform_indices = @transform_9, window_bounds = array<i64: 16, 1>}, {transform_indices = @transform_10, window_bounds = array<i64: 16, 1>}, {transform_indices = @transform_11, window_bounds = array<i64: 16, 256>}]} {
    %c0 = arith.constant 0 : index
    %0 = memref.load %arg1[%c0] : memref<2xf32, #tpu.memory_space<smem>>
    %c1 = arith.constant 1 : index
    %1 = memref.load %arg1[%c1] : memref<2xf32, #tpu.memory_space<smem>>
    %c0_0 = arith.constant 0 : index
    %c0_1 = arith.constant 0 : index
    %2 = vector.load %arg2[%c0_0, %c0_1] : memref<16x256xf32, #tpu.memory_space<vmem>>, vector<16x256xf32>
    %3 = vector.broadcast %0 : f32 to vector<16x256xf32>
    %4 = arith.mulf %2, %3 : vector<16x256xf32>
    %c0_2 = arith.constant 0 : index
    %c0_3 = arith.constant 0 : index
    %5 = vector.load %arg3[%c0_2, %c0_3] : memref<16x256xf32, #tpu.memory_space<vmem>>, vector<16x256xf32>
    %6 = vector.broadcast %1 : f32 to vector<16x256xf32>
    %7 = arith.mulf %5, %6 : vector<16x256xf32>
    %8 = arith.addf %4, %7 : vector<16x256xf32>
    %cst = arith.constant 0.000000e+00 : f32
    %9 = vector.broadcast %cst : f32 to vector<16x256xf32>
    %10 = arith.maximumf %8, %9 : vector<16x256xf32>
    %c1_i32 = arith.constant 1 : i32
    %11 = tpu.dynamic_rotate %10 by %c1_i32 dim 1 : vector<16x256xf32>, i32 -> vector<16x256xf32>
    %c0_4 = arith.constant 0 : index
    %c0_5 = arith.constant 0 : index
    %12 = vector.load %arg4[%c0_4, %c0_5] : memref<1x256xf32, #tpu.memory_space<vmem>>, vector<1x256xf32>
    %13 = vector.broadcast %12 : vector<1x256xf32> to vector<16x256xf32>
    %14 = arith.mulf %11, %13 : vector<16x256xf32>
    %c255_i32 = arith.constant 255 : i32
    %15 = tpu.dynamic_rotate %10 by %c255_i32 dim 1 : vector<16x256xf32>, i32 -> vector<16x256xf32>
    %c0_6 = arith.constant 0 : index
    %c0_7 = arith.constant 0 : index
    %16 = vector.load %arg5[%c0_6, %c0_7] : memref<1x256xf32, #tpu.memory_space<vmem>>, vector<1x256xf32>
    %17 = vector.broadcast %16 : vector<1x256xf32> to vector<16x256xf32>
    %18 = arith.mulf %15, %17 : vector<16x256xf32>
    %c0_8 = arith.constant 0 : index
    %c0_9 = arith.constant 0 : index
    %19 = vector.load %arg7[%c0_8, %c0_9] : memref<16x16xf32, #tpu.memory_space<vmem>>, vector<16x16xf32>
    %cst_10 = arith.constant dense<0.000000e+00> : vector<16x256xf32>
    %20 = tpu.matmul %19, %10, %cst_10 {dimension_numbers = #tpu.dot_dimension_numbers<[1], [0], [0], [1], [0, 0, 1, 1], [], []>} : vector<16x16xf32>, vector<16x256xf32>, vector<16x256xf32> -> vector<16x256xf32>
    %c0_11 = arith.constant 0 : index
    %c0_12 = arith.constant 0 : index
    %21 = vector.load %arg6[%c0_11, %c0_12] : memref<16x16xf32, #tpu.memory_space<vmem>>, vector<16x16xf32>
    %cst_13 = arith.constant dense<0.000000e+00> : vector<16x256xf32>
    %22 = tpu.matmul %21, %14, %cst_13 {dimension_numbers = #tpu.dot_dimension_numbers<[1], [0], [0], [1], [0, 0, 1, 1], [], []>} : vector<16x16xf32>, vector<16x256xf32>, vector<16x256xf32> -> vector<16x256xf32>
    %23 = arith.addf %20, %22 : vector<16x256xf32>
    %c0_14 = arith.constant 0 : index
    %c0_15 = arith.constant 0 : index
    %24 = vector.load %arg8[%c0_14, %c0_15] : memref<16x16xf32, #tpu.memory_space<vmem>>, vector<16x16xf32>
    %cst_16 = arith.constant dense<0.000000e+00> : vector<16x256xf32>
    %25 = tpu.matmul %24, %18, %cst_16 {dimension_numbers = #tpu.dot_dimension_numbers<[1], [0], [0], [1], [0, 0, 1, 1], [], []>} : vector<16x16xf32>, vector<16x256xf32>, vector<16x256xf32> -> vector<16x256xf32>
    %26 = arith.addf %23, %25 : vector<16x256xf32>
    %c0_17 = arith.constant 0 : index
    %c0_18 = arith.constant 0 : index
    %27 = vector.load %arg9[%c0_17, %c0_18] : memref<16x1xf32, #tpu.memory_space<vmem>>, vector<16x1xf32>
    %28 = vector.broadcast %27 : vector<16x1xf32> to vector<16x256xf32>
    %29 = arith.addf %26, %28 : vector<16x256xf32>
    %cst_19 = arith.constant dense<0.000000e+00> : vector<16xf32>
    %30 = vector.multi_reduction <add>, %29, %cst_19 [1] : vector<16x256xf32> to vector<16xf32>
    %31 = vector.shape_cast %30 : vector<16xf32> to vector<16x1xf32>
    %cst_20 = arith.constant 3.906250e-03 : f32
    %32 = vector.broadcast %cst_20 : f32 to vector<16x1xf32>
    %33 = arith.mulf %31, %32 : vector<16x1xf32>
    %34 = vector.broadcast %33 : vector<16x1xf32> to vector<16x256xf32>
    %35 = arith.subf %29, %34 : vector<16x256xf32>
    %36 = arith.mulf %35, %35 : vector<16x256xf32>
    %cst_21 = arith.constant dense<0.000000e+00> : vector<16xf32>
    %37 = vector.multi_reduction <add>, %36, %cst_21 [1] : vector<16x256xf32> to vector<16xf32>
    %38 = vector.shape_cast %37 : vector<16xf32> to vector<16x1xf32>
    %cst_22 = arith.constant 3.906250e-03 : f32
    %39 = vector.broadcast %cst_22 : f32 to vector<16x1xf32>
    %40 = arith.mulf %38, %39 : vector<16x1xf32>
    %cst_23 = arith.constant 9.99999974E-6 : f32
    %41 = vector.broadcast %cst_23 : f32 to vector<16x1xf32>
    %42 = arith.addf %40, %41 : vector<16x1xf32>
    %43 = math.rsqrt %42 : vector<16x1xf32>
    %44 = vector.broadcast %43 : vector<16x1xf32> to vector<16x256xf32>
    %45 = arith.mulf %35, %44 : vector<16x256xf32>
    %c0_24 = arith.constant 0 : index
    %c0_25 = arith.constant 0 : index
    %46 = vector.load %arg10[%c0_24, %c0_25] : memref<16x1xf32, #tpu.memory_space<vmem>>, vector<16x1xf32>
    %47 = vector.broadcast %46 : vector<16x1xf32> to vector<16x256xf32>
    %48 = arith.mulf %47, %45 : vector<16x256xf32>
    %c0_26 = arith.constant 0 : index
    %c0_27 = arith.constant 0 : index
    %49 = vector.load %arg11[%c0_26, %c0_27] : memref<16x1xf32, #tpu.memory_space<vmem>>, vector<16x1xf32>
    %50 = vector.broadcast %49 : vector<16x1xf32> to vector<16x256xf32>
    %51 = arith.addf %48, %50 : vector<16x256xf32>
    %c0_28 = arith.constant 0 : index
    %c0_29 = arith.constant 0 : index
    %52 = vector.load %arg12[%c0_28, %c0_29] : memref<16x256xf32, #tpu.memory_space<vmem>>, vector<16x256xf32>
    tpu.vector_store %arg12[%c0_28, %c0_29], %51 {strides = array<i32>} : memref<16x256xf32, #tpu.memory_space<vmem>>, vector<16x256xf32>,
    return
  }
  func.func @transform_0(%arg0: i32) -> i32 {
    %c0_i32 = arith.constant 0 : i32
    %c0_i32_0 = arith.constant 0 : i32
    return %c0_i32 : i32
  }
  func.func @transform_1(%arg0: i32) -> (i32, i32) {
    %c0_i32 = arith.constant 0 : i32
    %c0_i32_0 = arith.constant 0 : i32
    %c0_i32_1 = arith.constant 0 : i32
    return %c0_i32, %c0_i32_0 : i32, i32
  }
  func.func @transform_2(%arg0: i32) -> (i32, i32) {
    %c0_i32 = arith.constant 0 : i32
    %c0_i32_0 = arith.constant 0 : i32
    %c0_i32_1 = arith.constant 0 : i32
    return %c0_i32, %c0_i32_0 : i32, i32
  }
  func.func @transform_3(%arg0: i32) -> (i32, i32) {
    %c0_i32 = arith.constant 0 : i32
    %c0_i32_0 = arith.constant 0 : i32
    %c0_i32_1 = arith.constant 0 : i32
    return %c0_i32, %c0_i32_0 : i32, i32
  }
  func.func @transform_4(%arg0: i32) -> (i32, i32) {
    %c0_i32 = arith.constant 0 : i32
    %c0_i32_0 = arith.constant 0 : i32
    %c0_i32_1 = arith.constant 0 : i32
    return %c0_i32, %c0_i32_0 : i32, i32
  }
  func.func @transform_5(%arg0: i32) -> (i32, i32) {
    %c0_i32 = arith.constant 0 : i32
    %c0_i32_0 = arith.constant 0 : i32
    return %arg0, %c0_i32 : i32, i32
  }
  func.func @transform_6(%arg0: i32) -> (i32, i32) {
    %c0_i32 = arith.constant 0 : i32
    %c0_i32_0 = arith.constant 0 : i32
    return %arg0, %c0_i32 : i32, i32
  }
  func.func @transform_7(%arg0: i32) -> (i32, i32) {
    %c0_i32 = arith.constant 0 : i32
    %c0_i32_0 = arith.constant 0 : i32
    return %arg0, %c0_i32 : i32, i32
  }
  func.func @transform_8(%arg0: i32) -> (i32, i32) {
    %c0_i32 = arith.constant 0 : i32
    %c0_i32_0 = arith.constant 0 : i32
    return %arg0, %c0_i32 : i32, i32
  }
  func.func @transform_9(%arg0: i32) -> (i32, i32) {
    %c0_i32 = arith.constant 0 : i32
    %c0_i32_0 = arith.constant 0 : i32
    return %arg0, %c0_i32 : i32, i32
  }
  func.func @transform_10(%arg0: i32) -> (i32, i32) {
    %c0_i32 = arith.constant 0 : i32
    %c0_i32_0 = arith.constant 0 : i32
    return %arg0, %c0_i32 : i32, i32
  }
  func.func @transform_11(%arg0: i32) -> (i32, i32) {
    %c0_i32 = arith.constant 0 : i32
    %c0_i32_0 = arith.constant 0 : i32
    return %arg0, %c0_i32 : i32, i32
  }
}

</mosaic_0001>

<bundles_post_ra>
// kernel: tpu_custom_call.1
= control target key start
LH: loop header
LB: loop body
LE: loop exit
PB: predicated region body
PF: predicated region fallthrough
CT: control target
= control target key end

     0   :  { %16 = vsyncpa [#allocation5], 0  ;;  %s841_s0 = inlined_call_operand.hbm [shape: f32[2], index: 0, kind: input, shape index: {}]   ;;  %s842_s1 = inlined_call_operand.vmem [shape: f32[16,256], index: 1, kind: input, shape index: {}]   ;;  %s843_s2 = inlined_call_operand.hbm [shape: f32[16,256], index: 2, kind: input, shape index: {}]   ;;  %s844_s3 = inlined_call_operand.vmem [shape: f32[1,256], index: 3, kind: input, shape index: {}]   ;;  %s845_s4 = inlined_call_operand.vmem [shape: f32[1,256], index: 4, kind: input, shape index: {}]   ;;  %s846_s5 = inlined_call_operand.vmem [shape: f32[16,16], index: 5, kind: input, shape index: {}]   ;;  %s847_s6 = inlined_call_operand.hbm [shape: f32[16,16], index: 6, kind: input, shape index: {}]   ;;  %s848_s7 = inlined_call_operand.hbm [shape: f32[16,16], index: 7, kind: input, shape index: {}]   ;;  %s849_s8 = inlined_call_operand.vmem [shape: f32[16,1], index: 8, kind: input, shape index: {}]   ;;  %s850_s9 = inlined_call_operand.vmem [shape: f32[16,1], index: 9, kind: input, shape index: {}]   ;;  %s851_s10 = inlined_call_operand.vmem [shape: f32[16,1], index: 10, kind: input, shape index: {}]   ;;  %s852_s11 = inlined_call_operand.hbm [shape: f32[16,256], index: 11, kind: output, shape index: {}]  }
   0x1   :  { %17 = vsyncpa [#allocation3], 0 }
   0x2   :  { %18 = vsyncpa [#allocation8], 0 }
   0x3   :  { %19 = vsyncpa [#allocation4], 0  ;;  %s668_s17 = smov [#allocation7]  }
   0x4   :  { %s53_s18 = sshll.u32 %s668_s17, 4  ;;  %s54_s18 = int_to_ptr.vmem [resolvable:$true] %s53_s18 }
   0x5   :  { %s580_s19 = scalar_lea.vmem %s54_s18, 256  ;;  %p585_p1 = scmp.lt.s32.totalorder %s54_s18, %s54_s18 }
   0x6   :  { %p581_p0 = scmp.ne.s32.totalorder %s54_s18, %s580_s19  ;;  %p586_p2 = scmp.lt.s32.totalorder %s580_s19, %s580_s19 }
   0x8   :  { %p587_p3 = por %p586_p2, %p585_p1 }
   0xa   :  { %p588_p4 = pnand %p587_p3, %p581_p0 }
   0xc   :  { %591 = shalt.err (!%p588_p4)
}
   0xd   :  { %s669_s20 = smov 128   ;;  %s670_s21 = smov 8  }
   0xe   :  { %59 = dma.hbm_to_vmem [thread:$0]  %s847_s6, 256, %s54_s18, [#allocation8], %s669_s20, %s669_s20, %s670_s21  }
   0xf   :  { %s671_s24 = smov [#allocation2]   ;;  %s672_s27 = smov [#allocation6]  }
  0x10   :  { %27 = dma.hbm_to_smem %s841_s0, 16, %s671_s24, [#allocation5]  }
  0x11   :  { %s35_s28 = sshll.u32 %s672_s27, 4  ;;  %s36_s28 = int_to_ptr.vmem [resolvable:$true] %s35_s28 }
  0x12   :  { %s608_s29 = scalar_lea.vmem %s36_s28, 512  ;;  %p613_p6 = scmp.lt.s32.totalorder %s36_s28, %s36_s28 }
  0x13   :  { %p609_p5 = scmp.ne.s32.totalorder %s36_s28, %s608_s29  ;;  %p614_p7 = scmp.lt.s32.totalorder %s608_s29, %s608_s29 }
  0x15   :  { %p615_p8 = por %p614_p7, %p613_p6 }
  0x17   :  { %p616_p9 = pnand %p615_p8, %p609_p5 }
  0x19   :  { %619 = shalt.err (!%p616_p9)
}
  0x1a   :  { %s673_s30 = smov 256   ;;  %s674_s12 = smov 16  }
  0x1b   :  { %41 = dma.hbm_to_vmem [thread:$0]  %s843_s2, 512, %s36_s28, [#allocation3], %s673_s30, %s673_s30, %s674_s12  }
  0x1c   :  { %s675_s0 = smov [#allocation9]  }
  0x1d   :  { %s65_s14 = sshll.u32 %s675_s0, 4  ;;  %s66_s14 = int_to_ptr.vmem [resolvable:$true] %s65_s14 }
  0x1e   :  { %s628_s15 = scalar_lea.vmem %s66_s14, 256  ;;  %p633_p11 = scmp.lt.s32.totalorder %s66_s14, %s66_s14 }
  0x1f   :  { %p629_p10 = scmp.ne.s32.totalorder %s66_s14, %s628_s15  ;;  %p634_p12 = scmp.lt.s32.totalorder %s628_s15, %s628_s15 }
  0x21   :  { %p635_p13 = por %p634_p12, %p633_p11 }
  0x23   :  { %p636_p0 = pnand %p635_p13, %p629_p10 }
  0x25   :  { %639 = shalt.err (!%p636_p0)
}
  0x26   :  { %71 = dma.hbm_to_vmem [thread:$0]  %s848_s7, 256, %s66_s14, [#allocation8], %s669_s20, %s669_s20, %s670_s21  }
  0x27   :  { %660 = dma.done.wait [#allocation5], 16  }
  0x28   :  { %661 = vsyncadd [#allocation5], 4294967280 }
  0x29   :  { %662 = dma.done.wait [#allocation3], 512  }
  0x2a   :  { %663 = vsyncadd [#allocation3], 4294966784 }
  0x2b   :  { %664 = dma.done.wait [#allocation8], 512  }
  0x2c   :  { %665 = vsyncadd [#allocation8], 4294966784 }
  0x2d   :  { %90 = sfence }
  0x2e   :  { %s91_s2 = sld [smem:[#allocation2]]  ;;  %v95_v0 = vld [vmem:[%s842_s1 + $0x10] sm:$0xff]  ;;  %v93_v2 = vld [vmem:[%s842_s1] sm:$0xff]  ;;  %v96_v3 = vld [vmem:[%s842_s1 + $0x18] sm:$0xff]  ;;  %v676_v22 = vmov 0.0   ;;  %s678_s26 = smov 127   ;;  %v127_v30 = vlaneseq }
  0x2f   :  { %s542_s18 = sld [smem:[#allocation2 + $0x1]]  ;;  %v104_v1 = vld [vmem:[#allocation6 + $0x10] sm:$0xff]  ;;  %v102_v4 = vld [vmem:[#allocation6] sm:$0xff]  ;;  %v105_v5 = vld [vmem:[#allocation6 + $0x18] sm:$0xff]  ;;  %260 = vmatprep.mubr.f32.mxu1 %v676_v22  ;;  %254 = vmatprep.mubr.f32.mxu0 %v676_v22  ;;  %v679_v27 = vmov 0   ;;  %vm183_vm2 = vcmask 130048  }
  0x30   :  { %v94_v6 = vld [vmem:[%s842_s1 + $0x8] sm:$0xff]  ;;  %s677_s1 = smov 1   ;;  %566 = vset.pattern.permute.xlu0 %v679_v27  ;;  %567 = vset.pattern.permute.xlu1 %v679_v27  ;;  %v439_v28 = vld [vmem:[%s849_s8] sm:$0xff]  ;;  %v137_v31 = vshrl.u32 %v127_v30, 7  ;;  %v128_v32 = vand.u32 127, %v127_v30 }
  0x31   :  { %v103_v8 = vld [vmem:[#allocation6 + $0x8] sm:$0xff]  ;;  %v134_v35 = vld [vmem:[%s844_s3] sm:$0x3] }
  0x32   :  { %v440_v29 = vld [vmem:[%s849_s8 + $0x8] sm:$0xff]  ;;  %v138_v33 = vsub.s32 0, %v137_v31  ;;  %v142_v34 = vsub.s32 1, %v137_v31  ;;  %vm129_vm0 = vcmp.lt.s32.totalorder %v128_v32, 1  ;;  %v163_v40 = vld [vmem:[%s845_s4] sm:$0x3] }
  0x33   :  { %vm158_vm1 = vcmp.lt.s32.totalorder %v128_v32, 127  ;;  %v182_v57 = vld [vmem:[%s846_s5 + $0x8] sm:$0xff]  ;;  %v181_v60 = vld [vmem:[%s846_s5] sm:$0xff] }
  0x34   :  { %v97_v7 = vstv %s91_s2  ;;  %v139_v38 = vrot.slane %v134_v35, %v138_v33  ;;  %v143_v39 = vrot.slane %v134_v35, %v142_v34  ;;  %v168_v46 = vrot.slane %v163_v40, %v138_v33  ;;  %v488_v35 = vld [vmem:[%s850_s9 + $0x8] sm:$0xff] }
  0x35   :  { %v100_v9 = vmul.f32 %v97_v7, %v95_v0  ;;  %v106_v10 = vstv %s542_s18  ;;  %v98_v11 = vmul.f32 %v97_v7, %v93_v2  ;;  %v101_v12 = vmul.f32 %v97_v7, %v96_v3  ;;  %v179_v3 = vld [vmem:[#allocation7] sm:$0xff] }
  0x36   :  { %v109_v13 = vmul.f32 %v106_v10, %v104_v1  ;;  %v107_v14 = vmul.f32 %v106_v10, %v102_v4  ;;  %v110_v15 = vmul.f32 %v106_v10, %v105_v5  ;;  %v99_v16 = vmul.f32 %v97_v7, %v94_v6  ;;  %v350_v4 = vld [vmem:[#allocation9] sm:$0xff]  ;;  %v180_v5 = vld [vmem:[#allocation7 + $0x8] sm:$0xff]  ;;  %v351_v6 = vld [vmem:[#allocation9 + $0x8] sm:$0xff] }
  0x37   :  { %v108_v17 = vmul.f32 %v106_v10, %v103_v8  ;;  %v172_v49 = vrot.slane %v163_v40, %v142_v34 }
  0x38   :  { %v113_v18 = vadd.f32 %v109_v13, %v100_v9  ;;  %v111_v19 = vadd.f32 %v107_v14, %v98_v11  ;;  %v114_v20 = vadd.f32 %v110_v15, %v101_v12 }
  0x39   :  { %v112_v21 = vadd.f32 %v108_v17, %v99_v16 }
  0x3a   :  { %v776_v23 = vmax.f32 %v113_v18, 0.0  ;;  %v778_v24 = vmax.f32 %v111_v19, 0.0  ;;  %v118_v25 = vmax.f32 %v114_v20, 0.0 }
  0x3b   :  { %v782_v26 = vmax.f32 %v112_v21, 0.0 }
  0x3c   :  { %121 = vrot.lane.b32.xlu0 %v776_v23, %s677_s1  ;;  %119 = vrot.lane.b32.xlu1 %v778_v24, %s677_s1 }
  0x40   :  { %125 = vrot.lane.b32.xlu0 %v118_v25, %s677_s1  ;;  %123 = vrot.lane.b32.xlu1 %v782_v26, %s677_s1 }
  0x44   :  { %152 = vrot.lane.b32.xlu0 %v776_v23, %s678_s26  ;;  %156 = vrot.lane.b32.xlu1 %v118_v25, %s678_s26 }
  0x48   :  { %150 = vrot.lane.b32.xlu0 %v778_v24, %s678_s26  ;;  %154 = vrot.lane.b32.xlu1 %v782_v26, %s678_s26 }
  0x4c   :  { %443 = vperm.xlu0 %566, %v439_v28   ;;  %448 = vperm.xlu1 %567, %v440_v29  }
  0xae   :  { %v122_v36 = vpop.permute.xlu0 %121  ;;  %v120_v37 = vpop.permute.xlu1 %119 }
  0xb2   :  { %v126_v41 = vpop.permute.xlu0 %125  ;;  %v124_v42 = vpop.permute.xlu1 %123 }
  0xb3   :  { %v131_v43 = vsel %vm129_vm0, %v122_v36, %v126_v41  ;;  %v133_v44 = vsel %vm129_vm0, %v126_v41, %v122_v36  ;;  %v130_v45 = vsel %vm129_vm0, %v120_v37, %v124_v42  ;;  %v132_v47 = vsel %vm129_vm0, %v124_v42, %v120_v37  ;;  %v487_v36 = vld [vmem:[%s850_s9] sm:$0xff] }
  0xb4   :  { %v149_v48 = vmul.f32 %v143_v39, %v131_v43  ;;  %v148_v50 = vmul.f32 %v139_v38, %v133_v44  ;;  %v147_v51 = vmul.f32 %v143_v39, %v130_v45  ;;  %v146_v54 = vmul.f32 %v139_v38, %v132_v47 }
  0xb6   :  { %218 = vmatprep.subr.mxu0 %v149_v48  ;;  %549 = vmatprep.subr.mxu1 %v149_v48  ;;  %v153_v52 = vpop.permute.xlu0 %152  ;;  %v157_v53 = vpop.permute.xlu1 %156 }
  0xb7   :  { %v160_v55 = vsel %vm158_vm1, %v153_v52, %v157_v53  ;;  %v162_v56 = vsel %vm158_vm1, %v157_v53, %v153_v52  ;;  %219 = vmatpush1.msra.mxu0 %v148_v50  ;;  %551 = vmatpush1.msra.mxu1 %v148_v50  ;;  %v504_v52 = vld [vmem:[%s851_s10 + $0x8] sm:$0xff] }
  0xb8   :  { %v177_v58 = vmul.f32 %v168_v46, %v160_v55  ;;  %v178_v59 = vmul.f32 %v172_v49, %v162_v56  ;;  %220 = vmatprep.subr.mxu0 %v147_v51  ;;  %550 = vmatprep.subr.mxu1 %v147_v51  ;;  %v503_v51 = vld [vmem:[%s851_s10] sm:$0xff]  ;;  %s680_s10 = smov [#allocation10]  }
  0xb9   :  { %221 = vmatpush1.msra.mxu0 %v146_v54  ;;  %552 = vmatpush1.msra.mxu1 %v146_v54  ;;  %s528_s24 = sshll.u32 %s680_s10, 4  ;;  %s529_s24 = int_to_ptr.vmem [resolvable:$true] %s528_s24 }
  0xba   :  { %v151_v61 = vpop.permute.xlu0 %150  ;;  %544 = vmatmul.mubr.msk.f32.vlgmr.msra.gmra.mxu1 %vm183_vm2, %v182_v57  ;;  %301 = vmatprep.subr.mxu1 %v118_v25  ;;  %v155_v62 = vpop.permute.xlu1 %154  ;;  %s640_s25 = scalar_lea.vmem %s529_s24, 512  ;;  %p645_p2 = scmp.lt.s32.totalorder %s529_s24, %s529_s24 }
  0xbb   :  { %386 = vmatprep.subr.mxu0 %v178_v59  ;;  %v159_v63 = vsel %vm158_vm1, %v151_v61, %v155_v62  ;;  %v161_v0 = vsel %vm158_vm1, %v155_v62, %v151_v61  ;;  %543 = vmatmul.mubr.msk.f32.vlgmr.msra.gmra.mxu0 %vm183_vm2, %v181_v60  ;;  %p641_p1 = scmp.ne.s32.totalorder %s529_s24, %s640_s25  ;;  %p646_p3 = scmp.lt.s32.totalorder %s640_s25, %s640_s25 }
  0xbc   :  { %v175_v1 = vmul.f32 %v168_v46, %v159_v63  ;;  %v176_v2 = vmul.f32 %v172_v49, %v161_v0  ;;  %302 = vmatpush1.msra.mxu1 %v776_v23  ;;  %387 = vmatpush1.msra.mxu0 %v177_v58 }
  0xbd   :  { %303 = vmatprep.subr.mxu1 %v782_v26  ;;  %337 = vmatprep.mubr.f32.mxu1 %v676_v22  ;;  %p647_p4 = por %p646_p3, %p645_p2 }
  0xbe   :  { %304 = vmatpush1.msra.mxu1 %v778_v24  ;;  %388 = vmatprep.subr.mxu0 %v176_v2 }
  0xbf   :  { %545 = vmatmul.mubr.msk.f32.vlgmr.msra.gmra.mxu1 %vm183_vm2, %v179_v3  ;;  %389 = vmatpush1.msra.mxu0 %v175_v1  ;;  %p648_p5 = pnand %p647_p4, %p641_p1 }
  0xc0   :  { %422 = vmatprep.mubr.f32.mxu0 %v676_v22  ;;  %343 = vmatprep.mubr.f32.mxu1 %v676_v22 }
  0xc1   :  { %547 = vmatmul.mubr.msk.f32.vlgmr.msra.gmra.mxu0 %vm183_vm2, %v350_v4 }
  0xc2   :  { %428 = vmatprep.mubr.f32.mxu0 %v676_v22 }
  0xc3   :  { %546 = vmatmul.mubr.msk.f32.gmra.mxu1 %vm183_vm2, %v180_v5 }
  0xc5   :  { %548 = vmatmul.mubr.msk.f32.gmra.mxu0 %vm183_vm2, %v351_v6 }
  0xc7   :  { %v444_v17 = vpop.permute.xlu0 %443  ;;  %v449_v29 = vpop.permute.xlu1 %448 }
 0x17a   :  { %v262_v7 = vpop.f32.mrf.mxu1 }
 0x17b   :  { %v256_v8 = vpop.f32.mrf.mxu0 }
 0x17c   :  { %v264_v9 = vpop.f32.mrf.mxu1 }
 0x17d   :  { %v258_v10 = vpop.f32.mrf.mxu0 }
 0x17f   :  { %v339_v11 = vpop.f32.mrf.mxu1 }
 0x180   :  { %v340_v12 = vadd.f32 %v339_v11, %v256_v8 }
 0x181   :  { %v341_v13 = vpop.f32.mrf.mxu1  ;;  %v424_v14 = vpop.f32.mrf.mxu0 }
 0x182   :  { %v342_v15 = vadd.f32 %v341_v13, %v258_v10  ;;  %v435_v16 = vadd.f32 %v424_v14, %v340_v12 }
 0x183   :  { %v345_v18 = vpop.f32.mrf.mxu1  ;;  %v426_v19 = vpop.f32.mrf.mxu0 }
 0x184   :  { %v346_v20 = vadd.f32 %v345_v18, %v262_v7  ;;  %v436_v21 = vadd.f32 %v426_v19, %v342_v15  ;;  %v451_v24 = vadd.f32 %v444_v17, %v435_v16 }
 0x185   :  { %v347_v22 = vpop.f32.mrf.mxu1  ;;  %v430_v23 = vpop.f32.mrf.mxu0 }
 0x186   :  { %v452_v25 = vadd.f32 %v444_v17, %v436_v21  ;;  %v348_v26 = vadd.f32 %v347_v22, %v264_v9  ;;  %v437_v27 = vadd.f32 %v430_v23, %v346_v20 }
 0x187   :  { %v432_v28 = vpop.f32.mrf.mxu0 }
 0x188   :  { %v438_v30 = vadd.f32 %v432_v28, %v348_v26  ;;  %v455_v31 = vadd.f32 %v452_v25, %v451_v24  ;;  %v453_v32 = vadd.f32 %v449_v29, %v437_v27 }
 0x18a   :  { %v454_v33 = vadd.f32 %v449_v29, %v438_v30  ;;  %456 = vadd.xlane.f32.xlu1 %v455_v31 }
 0x18c   :  { %v458_v34 = vadd.f32 %v454_v33, %v453_v32 }
 0x18e   :  { %459 = vadd.xlane.f32.xlu0 %v458_v34 }
 0x19b   :  { %496 = vperm.xlu1 %567, %v488_v35  }
 0x1a4   :  { %491 = vperm.xlu0 %566, %v487_v36  }
 0x213   :  { %v457_v37 = vpop.xlane.xlu1 %456 }
 0x214   :  { %v461_v38 = vmul.f32 0.00390625, %v457_v37 }
 0x216   :  { %v463_v39 = vsub.f32 %v451_v24, %v461_v38  ;;  %v464_v40 = vsub.f32 %v452_v25, %v461_v38 }
 0x217   :  { %v460_v41 = vpop.xlane.xlu0 %459  ;;  %v497_v54 = vpop.permute.xlu1 %496 }
 0x218   :  { %v462_v42 = vmul.f32 0.00390625, %v460_v41  ;;  %v467_v43 = vmul.f32 %v463_v39, %v463_v39  ;;  %v468_v44 = vmul.f32 %v464_v40, %v464_v40 }
 0x21a   :  { %v465_v45 = vsub.f32 %v453_v32, %v462_v42  ;;  %v466_v46 = vsub.f32 %v454_v33, %v462_v42  ;;  %v471_v47 = vadd.f32 %v468_v44, %v467_v43 }
 0x21c   :  { %472 = vadd.xlane.f32.xlu0 %v471_v47  ;;  %v469_v48 = vmul.f32 %v465_v45, %v465_v45  ;;  %v470_v49 = vmul.f32 %v466_v46, %v466_v46 }
 0x21e   :  { %v474_v50 = vadd.f32 %v470_v49, %v469_v48 }
 0x21f   :  { %v492_v53 = vpop.permute.xlu0 %491 }
 0x220   :  { %475 = vadd.xlane.f32.xlu1 %v474_v50 }
 0x231   :  { %507 = vperm.xlu1 %567, %v503_v51  }
 0x232   :  { %512 = vperm.xlu0 %566, %v504_v52  }
 0x2a5   :  { %v473_v55 = vpop.xlane.xlu0 %472 }
 0x2a6   :  { %v477_v56 = vmul.f32 0.00390625, %v473_v55 }
 0x2a8   :  { %v479_v57 = vadd.f32 1e-05, %v477_v56 }
 0x2a9   :  { %v476_v58 = vpop.xlane.xlu1 %475 }
 0x2aa   :  { %568 = vrsqrt.f32 %v479_v57  ;;  %v478_v59 = vmul.f32 0.00390625, %v476_v58 }
 0x2ac   :  { %v480_v60 = vadd.f32 1e-05, %v478_v59 }
 0x2ad   :  { %v508_v3 = vpop.permute.xlu1 %507  ;;  %v513_v10 = vpop.permute.xlu0 %512 }
 0x2ae   :  { %570 = vrsqrt.f32 %v480_v60 }
 0x2b7   :  { %v569_v61 = vpop.eup %568 }
 0x2b8   :  { %v483_v62 = vmul.f32 %v569_v61, %v463_v39  ;;  %v484_v63 = vmul.f32 %v569_v61, %v464_v40 }
 0x2ba   :  { %v499_v0 = vmul.f32 %v492_v53, %v483_v62  ;;  %v500_v1 = vmul.f32 %v492_v53, %v484_v63 }
 0x2bb   :  { %v571_v2 = vpop.eup %570 }
 0x2bc   :  { %v485_v4 = vmul.f32 %v571_v2, %v465_v45  ;;  %v486_v5 = vmul.f32 %v571_v2, %v466_v46  ;;  %v515_v6 = vadd.f32 %v508_v3, %v499_v0  ;;  %v516_v7 = vadd.f32 %v508_v3, %v500_v1 }
 0x2be   :  { %v501_v8 = vmul.f32 %v497_v54, %v485_v4  ;;  %v502_v9 = vmul.f32 %v497_v54, %v486_v5  ;;  %519 = vst [vmem:[#allocation10] sm:$0xff] %v515_v6  ;;  %520 = vst [vmem:[#allocation10 + $0x8] sm:$0xff] %v516_v7 }
 0x2c0   :  { %v517_v11 = vadd.f32 %v513_v10, %v501_v8  ;;  %v518_v12 = vadd.f32 %v513_v10, %v502_v9 }
 0x2c2   :  { %521 = vst [vmem:[#allocation10 + $0x10] sm:$0xff] %v517_v11  ;;  %522 = vst [vmem:[#allocation10 + $0x18] sm:$0xff] %v518_v12 }
 0x2c3   :  { %651 = shalt.err (!%p648_p5)
}
 0x2c4   :  { %534 = dma.vmem_to_hbm [thread:$0]  %s529_s24, 512, %s852_s11, [#allocation4], %s673_s30, %s673_s30, %s674_s12  }
 0x2c5   :  { %666 = dma.done.wait [#allocation4], 512  }
 0x2c6   :  { %667 = vsyncadd [#allocation4], 4294966784 }
 0x2c7   :  { %538 = vsyncpa [#allocation3], 1 }
 0x2c8   :  { %539 = vsyncpa [#allocation8], 1 }
 0x2c9   :  { %540 = vsyncpa [#allocation4], 1 }
 0x2ca   :  { %541 = vsyncpa [#allocation5], 1 }

</bundles_post_ra>
